<compile_context>
chip_gen: v6e
topology: v6e:2x2x1
jax: 0.10.0
libtpu: 0.0.40
codegen_flags: <defaults>
</compile_context>

<pallas_src>
import functools

import jax
import jax.numpy as jnp
from jax import lax
from jax.experimental import pallas as pl
from jax.experimental.pallas import tpu as pltpu


# ---------------------------------------------------------------------------
# Tiled linear projection: out = x @ W^T (+ bias), i.e. F.linear semantics.
# ---------------------------------------------------------------------------
def _linear_kernel(x_ref, w_ref, o_ref, acc_ref, *, mxu_dtype):
    @pl.when(pl.program_id(2) == 0)
    def _():
        acc_ref[...] = jnp.zeros_like(acc_ref)

    acc_ref[...] += lax.dot_general(
        x_ref[...].astype(mxu_dtype), w_ref[...].astype(mxu_dtype),
        dimension_numbers=(((1,), (1,)), ((), ())),   # x @ W^T, no transpose op
        preferred_element_type=jnp.float32)

    @pl.when(pl.program_id(2) == pl.num_programs(2) - 1)
    def _():
        o_ref[...] = acc_ref[...].astype(o_ref.dtype)


def _linear_bias_kernel(x_ref, w_ref, b_ref, o_ref, acc_ref, *, mxu_dtype):
    @pl.when(pl.program_id(2) == 0)
    def _():
        acc_ref[...] = jnp.zeros_like(acc_ref)

    acc_ref[...] += lax.dot_general(
        x_ref[...].astype(mxu_dtype), w_ref[...].astype(mxu_dtype),
        dimension_numbers=(((1,), (1,)), ((), ())),
        preferred_element_type=jnp.float32)

    @pl.when(pl.program_id(2) == pl.num_programs(2) - 1)
    def _():
        o_ref[...] = (acc_ref[...] + b_ref[...]).astype(o_ref.dtype)


def _fit(dim, preferred):
    """Pick a tile size: preferred if it divides dim, else the full dim."""
    if dim <= preferred:
        return dim
    if dim % preferred == 0:
        return preferred
    return dim


def linear(x, w, b=None, *, mxu_dtype=jnp.float32,
           tm_pref=256, tn_pref=256, tk_pref=512):
    M, Din = x.shape
    Dout, Din_w = w.shape
    assert Din == Din_w
    tm = _fit(M, tm_pref)
    tn = _fit(Dout, tn_pref)
    tk = _fit(Din, tk_pref)
    grid = (M // tm, Dout // tn, Din // tk)

    cost = pl.CostEstimate(
        flops=2 * M * Dout * Din, transcendentals=0,
        bytes_accessed=4 * (M * Din + Dout * Din + M * Dout
                            + (Dout if b is not None else 0)))
    cparams = pltpu.CompilerParams(
        dimension_semantics=("parallel", "parallel", "arbitrary"))
    out_shape = jax.ShapeDtypeStruct((M, Dout), jnp.float32)

    if b is None:
        return pl.pallas_call(
            functools.partial(_linear_kernel, mxu_dtype=mxu_dtype),
            grid=grid,
            out_shape=out_shape,
            in_specs=[pl.BlockSpec((tm, tk), lambda m, n, k: (m, k)),
                      pl.BlockSpec((tn, tk), lambda m, n, k: (n, k))],
            out_specs=pl.BlockSpec((tm, tn), lambda m, n, k: (m, n)),
            scratch_shapes=[pltpu.VMEM((tm, tn), jnp.float32)],
            compiler_params=cparams,
            cost_estimate=cost,
        )(x, w)

    b2 = b.reshape(1, Dout)
    return pl.pallas_call(
        functools.partial(_linear_bias_kernel, mxu_dtype=mxu_dtype),
        grid=grid,
        out_shape=out_shape,
        in_specs=[pl.BlockSpec((tm, tk), lambda m, n, k: (m, k)),
                  pl.BlockSpec((tn, tk), lambda m, n, k: (n, k)),
                  pl.BlockSpec((1, tn), lambda m, n, k: (0, n))],
        out_specs=pl.BlockSpec((tm, tn), lambda m, n, k: (m, n)),
        scratch_shapes=[pltpu.VMEM((tm, tn), jnp.float32)],
        compiler_params=cparams,
        cost_estimate=cost,
    )(x, w, b2)


# ---------------------------------------------------------------------------
# Attention core: one grid step per batch computes every head and writes a
# lane-dense (N, D) output block.
# ---------------------------------------------------------------------------
def _attention_kernel(*refs, num_heads, head_dim, scale, mxu_dtype,
                      has_mask, need_weights):
    idx = 0
    qkv_ref = refs[idx]; idx += 1
    mask_ref = None
    if has_mask:
        mask_ref = refs[idx]; idx += 1
    o_ref = refs[idx]; idx += 1
    w_ref = refs[idx] if need_weights else None

    H, d = num_heads, head_dim

    q = qkv_ref[0, 0].astype(mxu_dtype)   # (N, D), heads concatenated on lanes
    k = qkv_ref[1, 0].astype(mxu_dtype)
    v = qkv_ref[2, 0].astype(mxu_dtype)

    if has_mask:
        valid = mask_ref[0] != 0           # (N, N), shared across all heads

    o_parts = []
    for h in range(H):                     # static unroll over heads
        lo, hi = h * d, (h + 1) * d
        # scores = q_h @ k_h^T * scale  (f32 accumulation on the MXU)
        s = lax.dot_general(
            q[:, lo:hi], k[:, lo:hi],
            dimension_numbers=(((1,), (1,)), ((), ())),
            preferred_element_type=jnp.float32) * scale
        if has_mask:
            # Large-negative instead of -inf: masked entries still get exactly
            # zero weight, but a fully-masked row yields a uniform row instead
            # of NaN.
            s = jnp.where(valid, s, jnp.float32(-1e30))

        # numerically stable softmax in f32; reciprocal+multiply, no divides
        s_max = jnp.max(s, axis=-1, keepdims=True)
        e = jnp.exp(s - s_max)
        denom = jnp.sum(e, axis=-1, keepdims=True)
        r = pl.reciprocal(denom, approx=False)

        if need_weights:
            p = e * r
            w_ref[0, h] = p
            o_h = jnp.dot(p.astype(mxu_dtype), v[:, lo:hi],
                          preferred_element_type=jnp.float32)
        else:
            # normalize after the PV matmul: N*d multiplies instead of N*N
            o_h = jnp.dot(e.astype(mxu_dtype), v[:, lo:hi],
                          preferred_element_type=jnp.float32) * r
        o_parts.append(o_h)

    # single lane-dense (N, D) store
    o_ref[0] = jnp.concatenate(o_parts, axis=-1).astype(o_ref.dtype)


# ---------------------------------------------------------------------------
# Full forward.
# ---------------------------------------------------------------------------
def sharable_mha(query, key, value, params, num_heads, mask=None,
                 need_weights=True, mxu_dtype=jnp.float32):
    """query/key/value: (N, B, D) float32.

    Returns (out (N, B, D), attn_w (B, H, N, N) or None if need_weights=False).
    """
    N, B, D = query.shape
    H = num_heads
    d = D // H
    scale = d ** (-0.5)
    M = N * B

    # --- Q/K/V projections (no bias) -------------------------------------
    if (query is key) and (key is value):
        # Self-attention: fuse into one projection with a stacked (3D, D)
        # weight so the activation slab is DMA'd from HBM once.
        wqkv = jnp.concatenate([params["wq"], params["wk"], params["wv"]], axis=0)
        qkv_flat = linear(query.reshape(M, D), wqkv, mxu_dtype=mxu_dtype)   # (M, 3D)
        qkv = qkv_flat.reshape(N, B, 3, D).transpose(2, 1, 0, 3)            # (3, B, N, D)
    else:
        q2 = linear(query.reshape(M, D), params["wq"], mxu_dtype=mxu_dtype)
        k2 = linear(key.reshape(M, D), params["wk"], mxu_dtype=mxu_dtype)
        v2 = linear(value.reshape(M, D), params["wv"], mxu_dtype=mxu_dtype)
        qkv = jnp.stack([q2, k2, v2], axis=0).reshape(3, N, B, D)
        qkv = qkv.transpose(0, 2, 1, 3)                                     # (3, B, N, D)

    # --- attention core ----------------------------------------------------
    has_mask = mask is not None
    attn_in = [qkv]
    in_specs = [pl.BlockSpec((3, 1, N, D), lambda b: (0, b, 0, 0))]
    if has_mask:
        attn_in.append((mask != 0).astype(jnp.int8))       # 4x less mask DMA
        in_specs.append(pl.BlockSpec((1, N, N), lambda b: (b, 0, 0)))

    if need_weights:
        out_shape = (jax.ShapeDtypeStruct((B, N, D), jnp.float32),
                     jax.ShapeDtypeStruct((B, H, N, N), jnp.float32))
        out_specs = (pl.BlockSpec((1, N, D), lambda b: (b, 0, 0)),
                     pl.BlockSpec((1, H, N, N), lambda b: (b, 0, 0, 0)))
    else:
        out_shape = jax.ShapeDtypeStruct((B, N, D), jnp.float32)
        out_specs = pl.BlockSpec((1, N, D), lambda b: (b, 0, 0))

    cost = pl.CostEstimate(
        flops=4 * B * H * N * N * d,
        transcendentals=B * H * N * N,
        bytes_accessed=(4 * (3 * B * N * D + B * N * D)
                        + (4 * B * H * N * N if need_weights else 0)
                        + (B * N * N if has_mask else 0)))

    kernel = functools.partial(
        _attention_kernel, num_heads=H, head_dim=d, scale=scale,
        mxu_dtype=mxu_dtype, has_mask=has_mask, need_weights=need_weights)

    res = pl.pallas_call(
        kernel,
        grid=(B,),
        out_shape=out_shape,
        in_specs=in_specs,
        out_specs=out_specs,
        compiler_params=pltpu.CompilerParams(dimension_semantics=("parallel",)),
        cost_estimate=cost,
    )(*attn_in)

    if need_weights:
        attn_out, attn_w = res
    else:
        attn_out, attn_w = res, None

    # Dropout(p=0.1): eval-mode identity.
    # TODO(synk): training-mode dropout would need pltpu PRNG.

    # --- output projection (bias), then single layout transpose ------------
    out = linear(attn_out.reshape(B * N, D), params["wo"], params["bo"],
                 mxu_dtype=mxu_dtype)
    out = out.reshape(B, N, D).transpose(1, 0, 2)          # -> (N, B, D)
    return out, attn_w


# ---------------------------------------------------------------------------
# Plain-JAX reference (correctness check against the Pallas path).
# ---------------------------------------------------------------------------
def reference_mha(query, key, value, params, num_heads, mask=None):
    N, B, D = query.shape
    H = num_heads
    d = D // H
    scale = d ** (-0.5)
    q = (query.reshape(N * B, D) @ params["wq"].T).reshape(N, B, H, d).transpose(1, 2, 0, 3)
    k = (key.reshape(N * B, D) @ params["wk"].T).reshape(N, B, H, d).transpose(1, 2, 0, 3)
    v = (value.reshape(N * B, D) @ params["wv"].T).reshape(N, B, H, d).transpose(1, 2, 0, 3)
    s = jnp.einsum("bhid,bhjd->bhij", q, k) * scale
    if mask is not None:
        s = jnp.where(mask[:, None, :, :] == 0, -jnp.inf, s)
    w = jax.nn.softmax(s, axis=-1)
    o = jnp.einsum("bhij,bhjd->bhid", w, v)
    o = o.transpose(2, 0, 1, 3).reshape(N * B, D)
    out = (o @ params["wo"].T + params["bo"]).reshape(N, B, D)
    return out, w


if __name__ == "__main__":
    # Small shapes consistent with the module: seq N=8, batch B=2, embed D=32, heads H=4.
    N, B, D, H = 8, 2, 32, 4
    key0 = jax.random.PRNGKey(0)
    kq, kk, kv, k1, k2, k3, k4, k5 = jax.random.split(key0, 8)

    query = jax.random.normal(kq, (N, B, D), jnp.float32)
    key_in = jax.random.normal(kk, (N, B, D), jnp.float32)
    value = jax.random.normal(kv, (N, B, D), jnp.float32)

    # Deterministic parameter init (PyTorch module leaves weights uninitialized).
    params = {
        "wq": 0.02 * jax.random.normal(k1, (D, D), jnp.float32),
        "wk": 0.02 * jax.random.normal(k2, (D, D), jnp.float32),
        "wv": 0.02 * jax.random.normal(k3, (D, D), jnp.float32),
        "wo": 0.02 * jax.random.normal(k4, (D, D), jnp.float32),
        "bo": 0.02 * jax.random.normal(k5, (D,), jnp.float32),
    }

    # 1) General (cross-attention) path, no mask, f32 operands.
    out, attn_w = sharable_mha(query, key_in, value, params, H, mask=None)
    jax.block_until_ready((out, attn_w))
    ref_out, ref_w = reference_mha(query, key_in, value, params, H, mask=None)
    assert out.shape == (N, B, D) and attn_w.shape == (B, H, N, N)
    assert jnp.allclose(out, ref_out, atol=1e-4, rtol=1e-4)
    assert jnp.allclose(attn_w, ref_w, atol=1e-5, rtol=1e-5)

    # 2) Self-attention (fused QKV projection) with a causal mask.
    causal = jnp.broadcast_to(jnp.tril(jnp.ones((N, N), jnp.float32)), (B, N, N))
    out_s, w_s = sharable_mha(query, query, query, params, H, mask=causal)
    jax.block_until_ready((out_s, w_s))
    ref_out_s, ref_w_s = reference_mha(query, query, query, params, H, mask=causal)
    assert jnp.allclose(out_s, ref_out_s, atol=1e-4, rtol=1e-4)
    assert jnp.allclose(w_s, ref_w_s, atol=1e-5, rtol=1e-5)

    # 3) need_weights=False path (attn_w HBM traffic elided).
    out_nw, w_nw = sharable_mha(query, key_in, value, params, H, mask=None,
                                need_weights=False)
    jax.block_until_ready(out_nw)
    assert w_nw is None
    assert jnp.allclose(out_nw, ref_out, atol=1e-4, rtol=1e-4)

    # 4) bf16 MXU operands (f32 accumulation / f32 softmax) -- looser tolerance.
    out_bf, w_bf = sharable_mha(query, key_in, value, params, H, mask=None,
                                mxu_dtype=jnp.bfloat16)
    jax.block_until_ready((out_bf, w_bf))
    assert jnp.allclose(out_bf, ref_out, atol=3e-2, rtol=3e-2)
    assert jnp.allclose(w_bf, ref_w, atol=3e-2, rtol=3e-2)

    print("KERNEL_OK")
</pallas_src>

<mosaic_0001>
module attributes {stable_mosaic.version = 11 : i64} {
  func.func @_linear_kernel(%arg0: i32, %arg1: i32, %arg2: i32, %arg3: memref<16x32xf32, #tpu.memory_space<vmem>>, %arg4: memref<32x32xf32, #tpu.memory_space<vmem>>, %arg5: memref<16x32xf32, #tpu.memory_space<vmem>>, %arg6: memref<16x32xf32, #tpu.memory_space<vmem>>) attributes {dimension_semantics = [#tpu.dimension_semantics<parallel>, #tpu.dimension_semantics<parallel>, #tpu.dimension_semantics<arbitrary>], iteration_bounds = array<i64: 1, 1, 1>, scalar_prefetch = 0 : i64, scratch_operands = 1 : i64, tpu.core_type = #tpu.core_type<tc>, window_params = [{transform_indices = @transform_0, window_bounds = array<i64: 16, 32>}, {transform_indices = @transform_1, window_bounds = array<i64: 32, 32>}, {transform_indices = @transform_2, window_bounds = array<i64: 16, 32>}]} {
    %c0_i32 = arith.constant 0 : i32
    %0 = arith.cmpi eq, %arg2, %c0_i32 : i32
    %1 = arith.extui %0 : i1 to i32
    %c0_i32_0 = arith.constant 0 : i32
    %2 = arith.cmpi ne, %1, %c0_i32_0 : i32
    scf.if %2 {
      %cst_10 = arith.constant 0.000000e+00 : f32
      %12 = vector.broadcast %cst_10 : f32 to vector<16x32xf32>
      %c0_11 = arith.constant 0 : index
      %c0_12 = arith.constant 0 : index
      %13 = vector.load %arg6[%c0_11, %c0_12] : memref<16x32xf32, #tpu.memory_space<vmem>>, vector<16x32xf32>
      tpu.vector_store %arg6[%c0_11, %c0_12], %12 {strides = array<i32>} : memref<16x32xf32, #tpu.memory_space<vmem>>, vector<16x32xf32>,
    } else {
    }
    %c0 = arith.constant 0 : index
    %c0_1 = arith.constant 0 : index
    %3 = vector.load %arg6[%c0, %c0_1] : memref<16x32xf32, #tpu.memory_space<vmem>>, vector<16x32xf32>
    %c0_2 = arith.constant 0 : index
    %c0_3 = arith.constant 0 : index
    %4 = vector.load %arg3[%c0_2, %c0_3] : memref<16x32xf32, #tpu.memory_space<vmem>>, vector<16x32xf32>
    %c0_4 = arith.constant 0 : index
    %c0_5 = arith.constant 0 : index
    %5 = vector.load %arg4[%c0_4, %c0_5] : memref<32x32xf32, #tpu.memory_space<vmem>>, vector<32x32xf32>
    %cst = arith.constant dense<0.000000e+00> : vector<16x32xf32>
    %6 = tpu.matmul %4, %5, %cst {dimension_numbers = #tpu.dot_dimension_numbers<[1], [1], [0], [0], [0, 0, 1, 0], [], []>} : vector<16x32xf32>, vector<32x32xf32>, vector<16x32xf32> -> vector<16x32xf32>
    %7 = arith.addf %3, %6 : vector<16x32xf32>
    %c0_6 = arith.constant 0 : index
    %c0_7 = arith.constant 0 : index
    %8 = vector.load %arg6[%c0_6, %c0_7] : memref<16x32xf32, #tpu.memory_space<vmem>>, vector<16x32xf32>
    tpu.vector_store %arg6[%c0_6, %c0_7], %7 {strides = array<i32>} : memref<16x32xf32, #tpu.memory_space<vmem>>, vector<16x32xf32>,
    %c0_i32_8 = arith.constant 0 : i32
    %9 = arith.cmpi eq, %arg2, %c0_i32_8 : i32
    %10 = arith.extui %9 : i1 to i32
    %c0_i32_9 = arith.constant 0 : i32
    %11 = arith.cmpi ne, %10, %c0_i32_9 : i32
    scf.if %11 {
      %c0_10 = arith.constant 0 : index
      %c0_11 = arith.constant 0 : index
      %12 = vector.load %arg6[%c0_10, %c0_11] : memref<16x32xf32, #tpu.memory_space<vmem>>, vector<16x32xf32>
      %c0_12 = arith.constant 0 : index
      %c0_13 = arith.constant 0 : index
      %13 = vector.load %arg5[%c0_12, %c0_13] : memref<16x32xf32, #tpu.memory_space<vmem>>, vector<16x32xf32>
      tpu.vector_store %arg5[%c0_12, %c0_13], %12 {strides = array<i32>} : memref<16x32xf32, #tpu.memory_space<vmem>>, vector<16x32xf32>,
    } else {
    }
    return
  }
  func.func @transform_0(%arg0: i32, %arg1: i32, %arg2: i32) -> (i32, i32) {
    %c0_i32 = arith.constant 0 : i32
    return %arg0, %arg2 : i32, i32
  }
  func.func @transform_1(%arg0: i32, %arg1: i32, %arg2: i32) -> (i32, i32) {
    %c0_i32 = arith.constant 0 : i32
    return %arg1, %arg2 : i32, i32
  }
  func.func @transform_2(%arg0: i32, %arg1: i32, %arg2: i32) -> (i32, i32) {
    %c0_i32 = arith.constant 0 : i32
    return %arg0, %arg1 : i32, i32
  }
}

</mosaic_0001>

<bundles_post_ra>
// kernel: tpu_custom_call.1
= control target key start
LH: loop header
LB: loop body
LE: loop exit
PB: predicated region body
PF: predicated region fallthrough
CT: control target
= control target key end

     0   :  { %7 = vsyncpa [#allocation4], 0  ;;  %s328_s0 = inlined_call_operand.hbm [shape: f32[16,32], index: 0, kind: input, shape index: {}]   ;;  %s329_s1 = inlined_call_operand.hbm [shape: f32[32,32], index: 1, kind: input, shape index: {}]   ;;  %s330_s2 = inlined_call_operand.hbm [shape: f32[16,32], index: 2, kind: output, shape index: {}]  }
   0x1   :  { %8 = vsyncpa [#allocation7], 0 }
   0x2   :  { %9 = vsyncpa [#allocation5], 0  ;;  %s273_s9 = smov [#allocation3]  }
   0x3   :  { %s15_s10 = sshll.u32 %s273_s9, 4  ;;  %s16_s10 = int_to_ptr.vmem [resolvable:$true] %s15_s10 }
   0x4   :  { %s215_s11 = scalar_lea.vmem %s16_s10, 256  ;;  %p220_p1 = scmp.lt.s32.totalorder %s16_s10, %s16_s10 }
   0x5   :  { %p216_p0 = scmp.ne.s32.totalorder %s16_s10, %s215_s11  ;;  %p221_p2 = scmp.lt.s32.totalorder %s215_s11, %s215_s11 }
   0x7   :  { %p222_p3 = por %p221_p2, %p220_p1 }
   0x9   :  { %p223_p4 = pnand %p222_p3, %p216_p0 }
   0xb   :  { %226 = shalt.err (!%p223_p4)
}
   0xc   :  { %s274_s12 = smov 128   ;;  %s275_s13 = smov 8  }
   0xd   :  { %21 = dma.hbm_to_vmem [thread:$0]  %s328_s0, 256, %s16_s10, [#allocation4], %s274_s12, %s274_s12, %s275_s13  }
   0xe   :  { %s276_s16 = smov [#allocation6]  }
   0xf   :  { %s27_s17 = sshll.u32 %s276_s16, 4  ;;  %s28_s17 = int_to_ptr.vmem [resolvable:$true] %s27_s17 }
  0x10   :  { %s235_s18 = scalar_lea.vmem %s28_s17, 512  ;;  %p240_p6 = scmp.lt.s32.totalorder %s28_s17, %s28_s17 }
  0x11   :  { %p236_p5 = scmp.ne.s32.totalorder %s28_s17, %s235_s18  ;;  %p241_p7 = scmp.lt.s32.totalorder %s235_s18, %s235_s18 }
  0x13   :  { %p242_p8 = por %p241_p7, %p240_p6 }
  0x15   :  { %p243_p9 = pnand %p242_p8, %p236_p5 }
  0x17   :  { %246 = shalt.err (!%p243_p9)
}
  0x18   :  { %33 = dma.hbm_to_vmem [thread:$0]  %s329_s1, 512, %s28_s17, [#allocation7], %s274_s12, %s274_s12, %s275_s13  }
  0x19   :  { %267 = dma.done.wait [#allocation4], 256  }
  0x1a   :  { %268 = vsyncadd [#allocation4], 4294967040 }
  0x1b   :  { %269 = dma.done.wait [#allocation7], 512  }
  0x1c   :  { %270 = vsyncadd [#allocation7], 4294966784  ;;  %vm44_vm0 = vcmask 261120   ;;  %v277_v0 = vmov 0.0   ;;  %v54_v1 = vld [vmem:[#allocation6 + $0x18] sm:$0xff]  ;;  %v53_v2 = vld [vmem:[#allocation6 + $0x10] sm:$0xff] }
  0x1d   :  { %46 = vst.msk [vmem:[#allocation2 + $0x8] sm:$0xff] %vm44_vm0, %v277_v0  ;;  %45 = vst.msk [vmem:[#allocation2] sm:$0xff] %vm44_vm0, %v277_v0  ;;  %190 = vmatprep.subr.msk.mxu0 %vm44_vm0, %v54_v1  ;;  %v49_v3 = vld [vmem:[#allocation3] sm:$0xff]  ;;  %v52_v4 = vld [vmem:[#allocation6 + $0x8] sm:$0xff]  ;;  %s278_s0 = smov [#allocation8]  }
  0x1e   :  { %191 = vmatpush3.xpose.msk.msra.mxu0 %vm44_vm0, %v54_v1  ;;  %198 = vmatprep.mubr.msk.f32.mxu0 %vm44_vm0, %v49_v3  ;;  %v51_v5 = vld [vmem:[#allocation6] sm:$0xff]  ;;  %v50_v6 = vld [vmem:[#allocation3 + $0x8] sm:$0xff]  ;;  %s165_s1 = sshll.u32 %s278_s0, 4  ;;  %s166_s1 = int_to_ptr.vmem [resolvable:$true] %s165_s1 }
  0x1f   :  { %192 = vmatprep.subr.msk.mxu0 %vm44_vm0, %v53_v2  ;;  %s247_s21 = scalar_lea.vmem %s166_s1, 256  ;;  %p252_p11 = scmp.lt.s32.totalorder %s166_s1, %s166_s1 }
  0x20   :  { %p248_p10 = scmp.ne.s32.totalorder %s166_s1, %s247_s21  ;;  %p253_p12 = scmp.lt.s32.totalorder %s247_s21, %s247_s21 }
  0x22   :  { %193 = vmatpush3.xpose.msk.msra.mxu0 %vm44_vm0, %v53_v2  ;;  %p254_p13 = por %p253_p12, %p252_p11 }
  0x23   :  { %194 = vmatprep.subr.msk.mxu0 %vm44_vm0, %v52_v4 }
  0x24   :  { %v48_v7 = vld [vmem:[#allocation2 + $0x8] sm:$0xff]  ;;  %v47_v9 = vld [vmem:[#allocation2] sm:$0xff]  ;;  %p255_p0 = pnand %p254_p13, %p248_p10 }
  0x26   :  { %195 = vmatpush3.xpose.msk.msra.mxu0 %vm44_vm0, %v52_v4 }
  0x27   :  { %196 = vmatprep.subr.msk.mxu0 %vm44_vm0, %v51_v5 }
  0x2a   :  { %197 = vmatpush3.xpose.msk.msra.mxu0 %vm44_vm0, %v51_v5 }
  0x2d   :  { %199 = vmatmul.mubr.msk.f32.vlgmr.msra.gmra.mxu0 %vm44_vm0, %v50_v6 }
  0xed   :  { %v200_v8 = vpop.f32.mrf.mxu0 }
  0xee   :  { %v150_v10 = vadd.f32 %v200_v8, %v48_v7 }
  0xef   :  { %v140_v11 = vpop.f32.mrf.mxu0 }
  0xf0   :  { %152 = vst.msk [vmem:[#allocation2 + $0x8] sm:$0xff] %vm44_vm0, %v150_v10  ;;  %v149_v12 = vadd.f32 %v140_v11, %v47_v9 }
  0xf2   :  { %151 = vst.msk [vmem:[#allocation2] sm:$0xff] %vm44_vm0, %v149_v12 }
  0xf7   :  { %v157_v13 = vld [vmem:[#allocation2 + $0x8] sm:$0xff] }
  0xf8   :  { %159 = vst.msk [vmem:[#allocation8 + $0x8] sm:$0xff] %vm44_vm0, %v157_v13 }
  0xf9   :  { %v156_v14 = vld [vmem:[#allocation2] sm:$0xff] }
  0xfa   :  { %158 = vst.msk [vmem:[#allocation8] sm:$0xff] %vm44_vm0, %v156_v14 }
  0xfb   :  { %258 = shalt.err (!%p255_p0)
}
  0xfc   :  { %171 = dma.vmem_to_hbm [thread:$0]  %s166_s1, 256, %s330_s2, [#allocation5], %s274_s12, %s274_s12, %s275_s13  }
  0xfd   :  { %271 = dma.done.wait [#allocation5], 256  }
  0xfe   :  { %272 = vsyncadd [#allocation5], 4294967040 }
  0xff   :  { %175 = vsyncpa [#allocation4], 1 }
 0x100   :  { %176 = vsyncpa [#allocation7], 1 }
 0x101   :  { %177 = vsyncpa [#allocation5], 1 }

</bundles_post_ra>
